<compile_context>
chip_gen: v5e
topology: v5e:2x2
jax: 0.10.0
libtpu: 0.0.40
codegen_flags: <defaults>
</compile_context>

<pallas_src>
import jax
import jax.numpy as jnp
from jax.experimental import pallas as pl
from jax.experimental.pallas import tpu as pltpu


# ----------------------------- Pallas kernel -------------------------------

_RESIDENT_WEIGHT_BYTES = 6 * 1024 * 1024  # keep full (Kp, Cp) weight in VMEM if <= this


def _round_up(x, m):
    return (x + m - 1) // m * m


def _pick_tm(m_padded):
    # Prefer >=2 parallel M tiles so both v7x TensorCores get work; keep tm a
    # multiple of 256 when possible (v6e/v7x MXU alignment).
    for tm in (512, 256, 128):
        if m_padded >= 2 * tm:
            return tm
    return 128


def _pick_cp(cout):
    # Lane-dense output: 128 minimum; 256-granule when wider (v6e/v7x MXU cols).
    return 128 if cout <= 128 else _round_up(cout, 256)


def _pick_kp_tk(k):
    kp = 128 if k <= 128 else _round_up(k, 256)
    if kp <= 1024:
        return kp, kp          # single K step, weight sliced in-kernel
    return kp, (512 if kp % 512 == 0 else 256)


def _pallas_conv_matmul(patches, w_mat, bias):
    """patches (M, K) bf16, w_mat (K, Cout) f32, bias (Cout,) f32 -> (M, Cout) f32."""
    M, K = patches.shape
    Cout = w_mat.shape[1]

    tm = _pick_tm(_round_up(M, 128))
    Mp = _round_up(M, tm)
    Kp, tk = _pick_kp_tk(K)
    Cp = _pick_cp(Cout)

    # Pad in bf16 (patches arrive in bf16 on the hot path; no f32 copy).
    patches_p = jnp.pad(patches.astype(jnp.bfloat16), ((0, Mp - M), (0, Kp - K)))
    w_p = jnp.pad(w_mat.astype(jnp.bfloat16), ((0, Kp - K), (0, Cp - Cout)))
    b_p = jnp.pad(bias.astype(jnp.float32), (0, Cp - Cout)).reshape(1, Cp)

    resident = (Kp * Cp * 2) <= _RESIDENT_WEIGHT_BYTES

    def kernel(p_ref, w_ref, b_ref, o_ref):
        kk = pl.program_id(1)
        if resident:
            k0 = pl.multiple_of(kk * tk, 128)
            w = w_ref[pl.ds(k0, tk), :]          # slice the resident weight slab
        else:
            w = w_ref[...]
        acc = jnp.dot(p_ref[...], w, preferred_element_type=jnp.float32)

        @pl.when(kk == 0)
        def _():
            o_ref[...] = acc + b_ref[...]        # bias fused into K-step 0

        @pl.when(kk != 0)
        def _():
            o_ref[...] += acc                    # accumulate directly in o_ref

    if resident:
        # Constant block index -> DMA'd once, stays resident across the grid.
        w_spec = pl.BlockSpec((Kp, Cp), lambda i, kk: (0, 0))
        w_buf_bytes = 2 * Kp * Cp * 2
    else:
        w_spec = pl.BlockSpec((tk, Cp), lambda i, kk: (kk, 0))
        w_buf_bytes = 2 * tk * Cp * 2

    # Double-buffered patches + weight + bias + double-buffered f32 output.
    vmem_need = 2 * tm * tk * 2 + w_buf_bytes + 2 * Cp * 4 + 2 * tm * Cp * 4
    vmem_limit = min(max(int(1.5 * vmem_need) + (4 << 20), 16 << 20), 60 << 20)

    # TODO(synk): if profiling shows exposed DMA on the patch stream, try
    #   pipeline_mode=pl.Buffered(3) on the patch BlockSpec.
    out = pl.pallas_call(
        kernel,
        out_shape=jax.ShapeDtypeStruct((Mp, Cp), jnp.float32),
        grid_spec=pltpu.PrefetchScalarGridSpec(
            num_scalar_prefetch=0,
            grid=(Mp // tm, Kp // tk),                           # K (reduction) last
            in_specs=[
                pl.BlockSpec((tm, tk), lambda i, kk: (i, kk)),   # streamed patch tile
                w_spec,                                          # weight
                pl.BlockSpec((1, Cp), lambda i, kk: (0, 0)),     # bias
            ],
            out_specs=pl.BlockSpec((tm, Cp), lambda i, kk: (i, 0)),
        ),
        compiler_params=pltpu.CompilerParams(
            dimension_semantics=("parallel", "arbitrary"),
            vmem_limit_bytes=vmem_limit),
    )(patches_p, w_p, b_p)
    return out[:M, :Cout]


# ------------------------------ Module glue --------------------------------

def _spectral_normalize(weight, u0, eps=1e-12):
    """PyTorch-style spectral norm: W / sigma (one power iteration, no grad)."""
    cout = weight.shape[0]
    w2d = weight.reshape(cout, -1)

    def _nrm(v):
        return v / (jnp.linalg.norm(v) + eps)

    u = _nrm(u0)
    v = _nrm(w2d.T @ u)
    u = _nrm(w2d @ v)
    u = jax.lax.stop_gradient(u)
    v = jax.lax.stop_gradient(v)
    sigma = u @ (w2d @ v)
    return weight / sigma


def _reflect_index(idx, n):
    idx = jnp.where(idx < 0, -idx, idx)
    idx = jnp.where(idx >= n, 2 * (n - 1) - idx, idx)
    return idx


def _im2col_up_reflect(x, k, stride, pad, up):
    """im2col of reflection-pad(pad)(nearest-upsample(up)(x)) for a k x k conv,
    gathered straight from the pre-upsample NHWC tensor (the upsampled / padded
    activation is never materialized). Returns (N*OH*OW, k*k*C), K-order
    (kh, kw, cin)."""
    N, H, W, C = x.shape
    Hu, Wu = H * up, W * up
    OH = (Hu + 2 * pad - k) // stride + 1
    OW = (Wu + 2 * pad - k) // stride + 1
    oy = jnp.arange(OH) * stride - pad          # top-left coords in upsampled frame
    ox = jnp.arange(OW) * stride - pad
    slabs = []
    for di in range(k):
        ridx = _reflect_index(oy + di, Hu) // up
        for dj in range(k):
            cidx = _reflect_index(ox + dj, Wu) // up
            slabs.append(x[:, ridx][:, :, cidx])     # (N, OH, OW, C)
    p = jnp.stack(slabs, axis=3)                     # (N, OH, OW, k*k, C)
    return p.reshape(N * OH * OW, k * k * C), OH, OW


def _adain_relu_bf16_nhwc(x, mean_style, std_style, eps=1e-5):
    """Fused AdaIn (unbiased std over H*W) + ReLU + bf16 cast, NHWC layout."""
    B = x.shape[0]
    C = x.shape[-1]
    x32 = x.astype(jnp.float32)
    mean_feat = jnp.mean(x32, axis=(1, 2), keepdims=True)
    std_feat = jnp.std(x32, axis=(1, 2), ddof=1, keepdims=True) + eps
    ms = mean_style.reshape(B, 1, 1, C)
    ss = std_style.reshape(B, 1, 1, C)
    out = ss * (x32 - mean_feat) / std_feat + ms
    return jax.nn.relu(out).astype(jnp.bfloat16)


class ConvLayerPallas:
    """ReflectionPad2d + spectral_norm(Conv2d); matmul hot path in Pallas.
    Operates on NHWC; can fuse a leading nearest-upsample into the patch gather."""

    def __init__(self, in_channels, out_channels, kernel_size, stride,
                 padding=None, *, key):
        if padding is None:
            padding = kernel_size // 2
        self.padding = padding
        self.stride = stride
        self.kernel_size = kernel_size
        self.in_channels = in_channels
        self.out_channels = out_channels

        kw, kb, ku = jax.random.split(key, 3)
        fan_in = in_channels * kernel_size * kernel_size
        bound = 1.0 / float(fan_in) ** 0.5
        self.weight = jax.random.uniform(
            kw, (out_channels, in_channels, kernel_size, kernel_size),
            minval=-bound, maxval=bound, dtype=jnp.float32)
        self.bias = jax.random.uniform(
            kb, (out_channels,), minval=-bound, maxval=bound, dtype=jnp.float32)
        self.u = jax.random.normal(ku, (out_channels,), dtype=jnp.float32)

    def normalized_weight(self):
        return _spectral_normalize(self.weight, self.u)

    def __call__(self, x_nhwc, up=1):
        # x_nhwc: (N, H, W, Cin) bf16 -> (N, OH, OW, Cout) f32
        N, H, W, _ = x_nhwc.shape
        k, s, p = self.kernel_size, self.stride, self.padding
        w_sn = self.normalized_weight()
        # (Cout, Cin, kh, kw) -> (kh, kw, Cin, Cout) -> (k*k*Cin, Cout)
        w_mat = jnp.transpose(w_sn, (2, 3, 1, 0)).reshape(
            k * k * self.in_channels, self.out_channels)

        if k == 1 and p == 0 and s == 1 and up == 1:
            patches = x_nhwc.reshape(N * H * W, self.in_channels)
            OH, OW = H, W
        else:
            patches, OH, OW = _im2col_up_reflect(x_nhwc, k, s, p, up)

        rows = _pallas_conv_matmul(patches, w_mat, self.bias)      # (M, Cout) f32
        return rows.reshape(N, OH, OW, self.out_channels)


class AdaptiveResidualBlockUpPallas:
    def __init__(self, in_channels, out_channels, kernel_size=3, stride=1,
                 upsample=2, *, key):
        k1, k2, k3 = jax.random.split(key, 3)
        self.upsample = upsample
        self.conv_r1 = ConvLayerPallas(in_channels, out_channels, kernel_size,
                                       stride, key=k1)
        self.conv_r2 = ConvLayerPallas(out_channels, out_channels, kernel_size,
                                       stride, key=k2)
        self.conv_l = ConvLayerPallas(in_channels, out_channels, 1, 1, key=k3)

    def __call__(self, x, mean1, std1, mean2, std2):
        # x: (N, Cin, H, W) f32 -> (N, Cout, H*up, W*up) f32
        x_nhwc = jnp.transpose(x, (0, 2, 3, 1))                    # single entry transpose

        a1 = _adain_relu_bf16_nhwc(x_nhwc, mean1, std1)
        out = self.conv_r1(a1, up=self.upsample)                   # upsample fused in gather
        a2 = _adain_relu_bf16_nhwc(out, mean2, std2)
        out = self.conv_r2(a2, up=1)

        # 1x1 conv commutes with nearest upsample: conv on the small tensor first.
        res = self.conv_l(x_nhwc.astype(jnp.bfloat16), up=1)       # (N, H, W, Cout)
        res = jnp.repeat(jnp.repeat(res, self.upsample, axis=1), self.upsample, axis=2)

        y = res + out
        return jnp.transpose(y, (0, 3, 1, 2))                      # single exit transpose


# ------------------------------ Reference -----------------------------------

def _adain_nchw(x, mean_style, std_style, eps=1e-5):
    B, C, H, W = x.shape
    feat = x.reshape(B, C, H * W)
    std_feat = jnp.std(feat, axis=2, ddof=1)[..., None] + eps
    mean_feat = jnp.mean(feat, axis=2)[..., None]
    out = std_style * (feat - mean_feat) / std_feat + mean_style
    return out.reshape(B, C, H, W)


def _upsample_nchw(x, factor):
    return jnp.repeat(jnp.repeat(x, factor, axis=2), factor, axis=3)


def _ref_conv(x, w_sn, bias, stride, pad):
    xp = x if pad == 0 else jnp.pad(
        x, ((0, 0), (0, 0), (pad, pad), (pad, pad)), mode="reflect")
    out = jax.lax.conv_general_dilated(
        xp.astype(jnp.bfloat16), w_sn.astype(jnp.bfloat16),
        window_strides=(stride, stride), padding="VALID",
        dimension_numbers=("NCHW", "OIHW", "NCHW"),
        preferred_element_type=jnp.float32)
    return out + bias.reshape(1, -1, 1, 1)


def _ref_block(block, x, mean1, std1, mean2, std2):
    out = jax.nn.relu(_adain_nchw(x, mean1, std1))
    out = _upsample_nchw(out, block.upsample)
    out = _ref_conv(out, block.conv_r1.normalized_weight(), block.conv_r1.bias,
                    block.conv_r1.stride, block.conv_r1.padding)
    out = jax.nn.relu(_adain_nchw(out, mean2, std2))
    out = _ref_conv(out, block.conv_r2.normalized_weight(), block.conv_r2.bias,
                    block.conv_r2.stride, block.conv_r2.padding)
    res = _upsample_nchw(x, block.upsample)
    res = _ref_conv(res, block.conv_l.normalized_weight(), block.conv_l.bias,
                    block.conv_l.stride, block.conv_l.padding)
    return res + out


# --------------------------------- Main -------------------------------------

if __name__ == "__main__":
    key = jax.random.PRNGKey(0)
    k_x, k_p, k_m1, k_s1, k_m2, k_s2 = jax.random.split(key, 6)

    N, Cin, H, W = 2, 4, 16, 16
    Cout, ksz, stride, up = 8, 3, 1, 2

    x = jax.random.normal(k_x, (N, Cin, H, W), dtype=jnp.float32)
    mean1 = jax.random.normal(k_m1, (N, Cin, 1), dtype=jnp.float32)
    std1 = jnp.abs(jax.random.normal(k_s1, (N, Cin, 1), dtype=jnp.float32)) + 0.5
    mean2 = jax.random.normal(k_m2, (N, Cout, 1), dtype=jnp.float32)
    std2 = jnp.abs(jax.random.normal(k_s2, (N, Cout, 1), dtype=jnp.float32)) + 0.5

    block = AdaptiveResidualBlockUpPallas(Cin, Cout, ksz, stride, up, key=k_p)
    out = block(x, mean1, std1, mean2, std2)
    out = jax.block_until_ready(out)

    assert out.shape == (N, Cout, H * up, W * up), out.shape

    ref = _ref_block(block, x, mean1, std1, mean2, std2)
    assert jnp.allclose(out, ref, atol=5e-2, rtol=5e-2), \
        float(jnp.max(jnp.abs(out - ref)))

    print("KERNEL_OK")
</pallas_src>

<mosaic_0001>
module attributes {stable_mosaic.version = 11 : i64} {
  func.func @kernel(%arg0: i32, %arg1: i32, %arg2: memref<512x128xbf16, #tpu.memory_space<vmem>>, %arg3: memref<128x128xbf16, #tpu.memory_space<vmem>>, %arg4: memref<1x128xf32, #tpu.memory_space<vmem>>, %arg5: memref<512x128xf32, #tpu.memory_space<vmem>>) attributes {dimension_semantics = [#tpu.dimension_semantics<parallel>, #tpu.dimension_semantics<arbitrary>], iteration_bounds = array<i64: 4, 1>, scalar_prefetch = 0 : i64, scratch_operands = 0 : i64, tpu.core_type = #tpu.core_type<tc>, window_params = [{transform_indices = @transform_0, window_bounds = array<i64: 512, 128>}, {pipeline_mode = #tpu.pipeline_mode<synchronous>, transform_indices = @transform_1, window_bounds = array<i64: 128, 128>}, {pipeline_mode = #tpu.pipeline_mode<synchronous>, transform_indices = @transform_2, window_bounds = array<i64: 1, 128>}, {transform_indices = @transform_3, window_bounds = array<i64: 512, 128>}]} {
    %c128_i32 = arith.constant 128 : i32
    %0 = arith.muli %arg1, %c128_i32 : i32
    %1 = tpu.assume_multiple %0, 128 : i32
    %2 = arith.index_cast %1 : i32 to index
    %c0 = arith.constant 0 : index
    %3 = vector.load %arg3[%2, %c0] : memref<128x128xbf16, #tpu.memory_space<vmem>>, vector<128x128xbf16>
    %c0_0 = arith.constant 0 : index
    %c0_1 = arith.constant 0 : index
    %4 = vector.load %arg2[%c0_0, %c0_1] : memref<512x128xbf16, #tpu.memory_space<vmem>>, vector<512x128xbf16>
    %cst = arith.constant dense<0.000000e+00> : vector<512x128xf32>
    %5 = tpu.matmul %4, %3, %cst {dimension_numbers = #tpu.dot_dimension_numbers<[1], [0], [0], [1], [0, 0, 1, 1], [], []>} : vector<512x128xbf16>, vector<128x128xbf16>, vector<512x128xf32> -> vector<512x128xf32>
    %c0_i32 = arith.constant 0 : i32
    %6 = arith.cmpi eq, %arg1, %c0_i32 : i32
    %7 = arith.extui %6 : i1 to i32
    %c0_i32_2 = arith.constant 0 : i32
    %8 = arith.cmpi ne, %7, %c0_i32_2 : i32
    scf.if %8 {
      %c0_5 = arith.constant 0 : index
      %c0_6 = arith.constant 0 : index
      %12 = vector.load %arg4[%c0_5, %c0_6] : memref<1x128xf32, #tpu.memory_space<vmem>>, vector<1x128xf32>
      %13 = vector.broadcast %12 : vector<1x128xf32> to vector<512x128xf32>
      %14 = arith.addf %5, %13 : vector<512x128xf32>
      %c0_7 = arith.constant 0 : index
      %c0_8 = arith.constant 0 : index
      %15 = vector.load %arg5[%c0_7, %c0_8] : memref<512x128xf32, #tpu.memory_space<vmem>>, vector<512x128xf32>
      tpu.vector_store %arg5[%c0_7, %c0_8], %14 {strides = array<i32>} : memref<512x128xf32, #tpu.memory_space<vmem>>, vector<512x128xf32>,
    } else {
    }
    %c0_i32_3 = arith.constant 0 : i32
    %9 = arith.cmpi ne, %arg1, %c0_i32_3 : i32
    %10 = arith.extui %9 : i1 to i32
    %c0_i32_4 = arith.constant 0 : i32
    %11 = arith.cmpi ne, %10, %c0_i32_4 : i32
    scf.if %11 {
      %c0_5 = arith.constant 0 : index
      %c0_6 = arith.constant 0 : index
      %12 = vector.load %arg5[%c0_5, %c0_6] : memref<512x128xf32, #tpu.memory_space<vmem>>, vector<512x128xf32>
      %13 = arith.addf %12, %5 : vector<512x128xf32>
      %c0_7 = arith.constant 0 : index
      %c0_8 = arith.constant 0 : index
      %14 = vector.load %arg5[%c0_7, %c0_8] : memref<512x128xf32, #tpu.memory_space<vmem>>, vector<512x128xf32>
      tpu.vector_store %arg5[%c0_7, %c0_8], %13 {strides = array<i32>} : memref<512x128xf32, #tpu.memory_space<vmem>>, vector<512x128xf32>,
    } else {
    }
    return
  }
  func.func @transform_0(%arg0: i32, %arg1: i32) -> (i32, i32) {
    %c0_i32 = arith.constant 0 : i32
    return %arg0, %arg1 : i32, i32
  }
  func.func @transform_1(%arg0: i32, %arg1: i32) -> (i32, i32) {
    %c0_i32 = arith.constant 0 : i32
    %c0_i32_0 = arith.constant 0 : i32
    %c0_i32_1 = arith.constant 0 : i32
    return %c0_i32, %c0_i32_0 : i32, i32
  }
  func.func @transform_2(%arg0: i32, %arg1: i32) -> (i32, i32) {
    %c0_i32 = arith.constant 0 : i32
    %c0_i32_0 = arith.constant 0 : i32
    %c0_i32_1 = arith.constant 0 : i32
    return %c0_i32, %c0_i32_0 : i32, i32
  }
  func.func @transform_3(%arg0: i32, %arg1: i32) -> (i32, i32) {
    %c0_i32 = arith.constant 0 : i32
    %c0_i32_0 = arith.constant 0 : i32
    return %arg0, %c0_i32 : i32, i32
  }
}

</mosaic_0001>

<bundles_post_ra>
// kernel: tpu_custom_call.1
= control target key start
LH: loop header
LB: loop body
LE: loop exit
PB: predicated region body
PF: predicated region fallthrough
CT: control target
= control target key end

     0   :  { %s1980_s0 = inlined_call_operand.hbm [shape: bf16[2048,128], index: 0, kind: input, shape index: {}]   ;;  %s1981_s1 = inlined_call_operand.hbm [shape: bf16[128,128], index: 1, kind: input, shape index: {}]   ;;  %s1982_s2 = inlined_call_operand.vmem [shape: f32[1,128], index: 2, kind: input, shape index: {}]   ;;  %s1983_s3 = inlined_call_operand.hbm [shape: f32[2048,128], index: 3, kind: output, shape index: {}]  }
   0x1   :  { %1985 = sst [smem:[#allocation11_spill]] %s1981_s1 }
   0x2   :  { %8 = vsyncpa [#allocation3], 0 }
   0x3   :  { %10 = vsyncpa [#allocation3 + $0x1], 0 }
   0x4   :  { %11 = vsyncpa [#allocation6], 0 }
   0x5   :  { %12 = vsyncpa [#allocation4], 0 }
   0x6   :  { %14 = vsyncpa [#allocation4 + $0x1], 0  ;;  %s1656_s12 = smov 0   ;;  %s1658_s13 = smov 0  }
   0x7   :  { %s1660_s14 = smov 0   ;;  %s1662_s15 = smov 0  }
   0x8   :  { %s1664_s16 = smov 0   ;;  %s1666_s17 = smov 0  }
   0x9 LB: > { %s1162_s18 = sadd.s32 4294967295, %s1629_s17   ;;  %s1163_s19 = sadd.s32 4294967294, %s1629_s17   ;;  %s1629_s17 = sphi %s1666_s17, %s20_s17   ;;  %s1625_s16 = sphi %s1664_s16, %s1999_s16   ;;  %s1621_s15 = sphi %s1662_s15, %s1998_s15   ;;  %s1617_s14 = sphi %s1660_s14, %s1997_s14   ;;  %s1613_s13 = sphi %s1658_s13, %s1996_s13   ;;  %s1609_s12 = sphi %s1656_s12, %s1995_s12  }
   0xa   : > { %p54_p0 = scmp.ne.s32.totalorder %s1613_s13, %s1609_s12  ;;  %p1690_p1 = scmp.eq.s32.totalorder %s1162_s18, 0 }
   0xb   : > { %p1694_p2 = scmp.eq.s32.totalorder %s1162_s18, 3  ;;  %p126_p3 = scmp.eq.s32.totalorder %s1163_s19, 3 }
   0xc   : > { %p1700_p4 = por %p1690_p1, %p54_p0  ;;  %p1164_p5 = scmp.ge.s32.totalorder %s1629_s17, 1 }
   0xd   : > { %p1705_p6 = por %p126_p3, %p54_p0  ;;  %p133_p7 = scmp.lt.s32.totalorder %s1629_s17, 5 }
   0xe   : > { %s1990_s1 = sld [smem:[#allocation11_spill]]  ;;  %s1631_s28 = smov [#allocation5]  }
   0xf   : > { %p1713_p8 = pnand %p1164_p5, %p133_p7  ;;  %s146_s29 = sshll.u32 %s1631_s28, 4  ;;  %s147_s29 = int_to_ptr.vmem [resolvable:$true] %s146_s29 }
  0x10   : > { %s1984_s30 = smov 64   ;;  %s1633_s4 = smov 4  }
  0x11   : > { %p1413_p9 = pneg %p1713_p8  ;;  %s32_s5 = sadd.s32 1, %s1625_s16 }
  0x12   : > { %p34_p11 = scmp.ge.s32.totalorder %s32_s5, 4  ;;  %s41_s6 = sadd.s32 1, %s1617_s14 }
  0x13   : > { %p1414_p10 = pnand %p1413_p9, %p1690_p1  ;;  %p48_p12 = scmp.ne.s32.totalorder %s1617_s14, %s1613_s13 }
  0x14   : > { %s144_s26 = sshll.u32 %s1990_s1, 4  ;;  %p49_p13 = scmp.eq.s32.totalorder %s1629_s17, 0  ;;  %s145_s26 = int_to_ptr.hbm [resolvable:$true] %s144_s26 }
  0x15   : > { %1416 = dma.hbm_to_vmem [thread:$0]  (!%p1414_p10), %s145_s26, 1024, %s147_s29, [#allocation6], %s1984_s30, %s1984_s30, %s1633_s4  }
  0x16   : > { %s2001_s5 = smov (%p34_p11, %s32_s5), 0  ;;  %p1731_p0 = por %p49_p13, %p48_p12 }
  0x17   : > { %p1737_p3 = por %p1694_p2, %p48_p12  ;;  %s36_s9 = ssub.s32 %s1625_s16, %s2001_s5 }
  0x18   : > { %p1426_p5 = scmp.lt.s32.totalorder %s1629_s17, 4  ;;  %p39_p7 = scmp.eq.s32.totalorder %s36_s9, 0 }
  0x19   : > { %s163_s10 = sand.u32 1, %s1617_s14   ;;  %s1339_s19 = sshll.u32 %s1625_s16, 8 }
  0x1a   : > { %s1167_s11 = sshll.u32 %s163_s10, 8  ;;  %s173_s26 = scalar_lea.hbm %s1980_s0, %s1339_s19 }
  0x1b   : > { %s1746_s18 = scalar_select %p39_p7, %s1617_s14, %s41_s6  }
  0x1c   : > { %s167_s28 = scalar_lea.vmem [#allocation2], %s1167_s11  ;;  %s174_s21 = sshll.u32 %s173_s26, 4  ;;  %s175_s21 = int_to_ptr.hbm [resolvable:$true] %s174_s21 }
  0x1d   : > { %s176_s29 = sshll.u32 %s167_s28, 4  ;;  %p1418_p2 = pnand %p1426_p5, %p1731_p0  ;;  %s177_s29 = int_to_ptr.vmem [resolvable:$true] %s176_s29 }
  0x1e   : > { %s164_s30 = scalar_lea.sflag [#allocation3], %s163_s10  ;;  %s1994_s1 = smov 64  }
  0x1f   : > { %1420 = dma.hbm_to_vmem [thread:$0]  (!%p1418_p2), %s175_s21, 4096, %s177_s29, %s164_s30, %s1994_s1, %s1994_s1, %s1633_s4  }
  0x20   : > { %188 = sbr.rel (%p1713_p8) target bundleno = 332 (0x14c), region = 32  ;;  %s1760_s6 = sand.u32 (!%p1713_p8), 1, %s1613_s13  }
  0x21   : > { %s1171_s9 = sshll.u32 (!%p1713_p8), %s1760_s6, 8  ;;  %s191_s11 = scalar_lea.sflag (!%p1713_p8), [#allocation3], %s1760_s6 }
  0x22   : > { %s1764_s19 = scalar_lea.vmem (!%p1713_p8), [#allocation2], %s1171_s9 }
  0x25   : > { %1596 = dma.done.wait (%p1700_p4), %s191_s11, 4096  }
  0x26   : > { %1598 = vsyncadd (%p1700_p4), %s191_s11, 4294963200 }
  0x27   : > { %1600 = dma.done.wait (%p1690_p1), [#allocation6], 1024  }
  0x28   : > { %1602 = vsyncadd (%p1690_p1), [#allocation6], 4294966272  ;;  %v1347_v0 = vld [vmem:[#allocation5 + $0x38] sm:$0xff]  ;;  %v1346_v1 = vld [vmem:[#allocation5 + $0x30] sm:$0xff]  ;;  %s1173_s1 = sshll.u32 %s1760_s6, 9  ;;  %s1380_s30 = sshll.u32 %s1621_s15, 9 }
  0x29   : > { %550 = vmatpush.bf16.msra.mxu0 %v1347_v0  ;;  %1381 = vmatpush.bf16.msra.mxu1 %v1347_v0  ;;  %v1345_v2 = vld [vmem:[#allocation5 + $0x28] sm:$0xff]  ;;  %v1344_v3 = vld [vmem:[#allocation5 + $0x20] sm:$0xff]  ;;  %v1343_v4 = vld [vmem:[#allocation5 + $0x18] sm:$0xff]  ;;  %s1814_s27 = scalar_lea.vmem [#allocation7], %s1173_s1  ;;  %s1063_s10 = scalar_lea.hbm %s1983_s3, %s1380_s30 }
  0x2a   : > { %1382 = vmatpush.bf16.msra.mxu2 %v1347_v0  ;;  %1383 = vmatpush.bf16.msra.mxu3 %v1347_v0  ;;  %v1342_v5 = vld [vmem:[#allocation5 + $0x10] sm:$0xff]  ;;  %v1341_v6 = vld [vmem:[#allocation5 + $0x8] sm:$0xff]  ;;  %v1340_v7 = vld [vmem:[#allocation5] sm:$0xff]  ;;  %s1064_s15 = sshll.u32 %s1814_s27, 4  ;;  %s1066_s24 = sshll.u32 %s1063_s10, 4  ;;  %s1065_s15 = int_to_ptr.vmem [resolvable:$true] %s1064_s15  ;;  %s1067_s24 = int_to_ptr.hbm [resolvable:$true] %s1066_s24 }
  0x2b   : > { %v1348_v8 = vld [vmem:[%s1764_s19] sm:$0xff]  ;;  %v1349_v12 = vld [vmem:[%s1764_s19 + $0x8] sm:$0xff]  ;;  %v1350_v16 = vld [vmem:[%s1764_s19 + $0x10] sm:$0xff]  ;;  %s1052_s25 = scalar_lea.sflag [#allocation4], %s1760_s6  ;;  %s1557_s26 = sshra.s32 %s1067_s24, 4  ;;  %s1558_s26 = int_to_ptr.hbm [resolvable:$true] %s1557_s26 }
  0x2c   : > { %v1356_v9 = vld [vmem:[%s1764_s19 + $0x40] sm:$0xff]  ;;  %v1357_v13 = vld [vmem:[%s1764_s19 + $0x48] sm:$0xff]  ;;  %v1358_v17 = vld [vmem:[%s1764_s19 + $0x50] sm:$0xff]  ;;  %s1559_s28 = scalar_lea.hbm %s1558_s26, 512  ;;  %s1563_s9 = scalar_lea.hbm %s1983_s3, 2048 }
  0x2d   : > { %551 = vmatpush.bf16.msra.mxu0 %v1346_v1  ;;  %1384 = vmatpush.bf16.msra.mxu1 %v1346_v1  ;;  %v1364_v10 = vld [vmem:[%s1764_s19 + $0x80] sm:$0xff]  ;;  %v1365_v14 = vld [vmem:[%s1764_s19 + $0x88] sm:$0xff]  ;;  %v1366_v18 = vld [vmem:[%s1764_s19 + $0x90] sm:$0xff]  ;;  %p1560_p1 = scmp.ne.s32.totalorder %s1558_s26, %s1559_s28  ;;  %p1564_p9 = scmp.lt.s32.totalorder %s1558_s26, %s1983_s3 }
  0x2e   : > { %1385 = vmatpush.bf16.msra.mxu2 %v1346_v1  ;;  %1386 = vmatpush.bf16.msra.mxu3 %v1346_v1  ;;  %v1372_v11 = vld [vmem:[%s1764_s19 + $0xc0] sm:$0xff]  ;;  %v1373_v15 = vld [vmem:[%s1764_s19 + $0xc8] sm:$0xff]  ;;  %v1374_v19 = vld [vmem:[%s1764_s19 + $0xd0] sm:$0xff]  ;;  %p1565_p10 = scmp.lt.s32.totalorder %s1563_s9, %s1559_s28 }
  0x2f   : > { %v1351_v20 = vld [vmem:[%s1764_s19 + $0x18] sm:$0xff]  ;;  %v1352_v24 = vld [vmem:[%s1764_s19 + $0x20] sm:$0xff]  ;;  %v1353_v28 = vld [vmem:[%s1764_s19 + $0x28] sm:$0xff]  ;;  %p1561_p4 = pnand %p1560_p1, %p1737_p3 }
  0x30   : > { %v1359_v21 = vld [vmem:[%s1764_s19 + $0x58] sm:$0xff]  ;;  %v1360_v25 = vld [vmem:[%s1764_s19 + $0x60] sm:$0xff]  ;;  %v1361_v29 = vld [vmem:[%s1764_s19 + $0x68] sm:$0xff]  ;;  %p1566_p11 = por %p1565_p10, %p1564_p9 }
  0x31   : > { %552 = vmatpush.bf16.msra.mxu0 %v1345_v2  ;;  %1387 = vmatpush.bf16.msra.mxu1 %v1345_v2  ;;  %v1367_v22 = vld [vmem:[%s1764_s19 + $0x98] sm:$0xff]  ;;  %v1368_v26 = vld [vmem:[%s1764_s19 + $0xa0] sm:$0xff]  ;;  %v1369_v30 = vld [vmem:[%s1764_s19 + $0xa8] sm:$0xff]  ;;  %p1562_p8 = pneg %p1561_p4 }
  0x32   : > { %1388 = vmatpush.bf16.msra.mxu2 %v1345_v2  ;;  %1389 = vmatpush.bf16.msra.mxu3 %v1345_v2  ;;  %v1375_v23 = vld [vmem:[%s1764_s19 + $0xd8] sm:$0xff]  ;;  %v1376_v27 = vld [vmem:[%s1764_s19 + $0xe0] sm:$0xff]  ;;  %v1377_v31 = vld [vmem:[%s1764_s19 + $0xe8] sm:$0xff] }
  0x33   : > { %v1354_v32 = vld [vmem:[%s1764_s19 + $0x30] sm:$0xff]  ;;  %v1355_v36 = vld [vmem:[%s1764_s19 + $0x38] sm:$0xff]  ;;  %v1810_v40 = vld [vmem:[%s1982_s2] ss:$0 sm:$0xff]  ;;  %p1567_p12 = pnand %p1566_p11, %p1562_p8 }
  0x34   : > { %v1362_v33 = vld [vmem:[%s1764_s19 + $0x70] sm:$0xff]  ;;  %v1363_v37 = vld [vmem:[%s1764_s19 + $0x78] sm:$0xff] }
  0x35   : > { %553 = vmatpush.bf16.msra.mxu0 %v1344_v3  ;;  %1390 = vmatpush.bf16.msra.mxu1 %v1344_v3  ;;  %v1370_v34 = vld [vmem:[%s1764_s19 + $0xb0] sm:$0xff]  ;;  %v1371_v38 = vld [vmem:[%s1764_s19 + $0xb8] sm:$0xff] }
  0x36   : > { %1391 = vmatpush.bf16.msra.mxu2 %v1344_v3  ;;  %1392 = vmatpush.bf16.msra.mxu3 %v1344_v3  ;;  %v1378_v35 = vld [vmem:[%s1764_s19 + $0xf0] sm:$0xff]  ;;  %v1379_v39 = vld [vmem:[%s1764_s19 + $0xf8] sm:$0xff] }
  0x39   : > { %554 = vmatpush.bf16.msra.mxu0 %v1343_v4  ;;  %1393 = vmatpush.bf16.msra.mxu1 %v1343_v4 }
  0x3a   : > { %1394 = vmatpush.bf16.msra.mxu2 %v1343_v4  ;;  %1395 = vmatpush.bf16.msra.mxu3 %v1343_v4 }
  0x3d   : > { %555 = vmatpush.bf16.msra.mxu0 %v1342_v5  ;;  %1396 = vmatpush.bf16.msra.mxu1 %v1342_v5 }
  0x3e   : > { %1397 = vmatpush.bf16.msra.mxu2 %v1342_v5  ;;  %1398 = vmatpush.bf16.msra.mxu3 %v1342_v5 }
  0x41   : > { %556 = vmatpush.bf16.msra.mxu0 %v1341_v6  ;;  %1399 = vmatpush.bf16.msra.mxu1 %v1341_v6 }
  0x42   : > { %1400 = vmatpush.bf16.msra.mxu2 %v1341_v6  ;;  %1401 = vmatpush.bf16.msra.mxu3 %v1341_v6 }
  0x45   : > { %557 = vmatpush.bf16.msra.mxu0 %v1340_v7  ;;  %1402 = vmatpush.bf16.msra.mxu1 %v1340_v7 }
  0x46   : > { %1403 = vmatpush.bf16.msra.mxu2 %v1340_v7  ;;  %1404 = vmatpush.bf16.msra.mxu3 %v1340_v7 }
  0x48   : > { %558 = vmatmul.bf16.vlgmr.msra.gmra.mxu0 %v1348_v8  ;;  %598 = vmatmul.bf16.vlgmr.msra.gmra.mxu1 %v1356_v9 }
  0x49   : > { %638 = vmatmul.bf16.vlgmr.msra.gmra.mxu2 %v1364_v10  ;;  %678 = vmatmul.bf16.vlgmr.msra.gmra.mxu3 %v1372_v11 }
  0x58   : > { %563 = vmatmul.bf16.gmra.mxu0 %v1349_v12  ;;  %603 = vmatmul.bf16.gmra.mxu1 %v1357_v13 }
  0x59   : > { %643 = vmatmul.bf16.gmra.mxu2 %v1365_v14  ;;  %683 = vmatmul.bf16.gmra.mxu3 %v1373_v15 }
  0x68   : > { %568 = vmatmul.bf16.gmra.mxu0 %v1350_v16  ;;  %608 = vmatmul.bf16.gmra.mxu1 %v1358_v17 }
  0x69   : > { %648 = vmatmul.bf16.gmra.mxu2 %v1366_v18  ;;  %688 = vmatmul.bf16.gmra.mxu3 %v1374_v19 }
  0x78   : > { %573 = vmatmul.bf16.gmra.mxu0 %v1351_v20  ;;  %613 = vmatmul.bf16.gmra.mxu1 %v1359_v21 }
  0x79   : > { %653 = vmatmul.bf16.gmra.mxu2 %v1367_v22  ;;  %693 = vmatmul.bf16.gmra.mxu3 %v1375_v23 }
  0x88   : > { %578 = vmatmul.bf16.gmra.mxu0 %v1352_v24  ;;  %618 = vmatmul.bf16.gmra.mxu1 %v1360_v25 }
  0x89   : > { %658 = vmatmul.bf16.gmra.mxu2 %v1368_v26  ;;  %698 = vmatmul.bf16.gmra.mxu3 %v1376_v27 }
  0x98   : > { %583 = vmatmul.bf16.gmra.mxu0 %v1353_v28  ;;  %623 = vmatmul.bf16.gmra.mxu1 %v1361_v29 }
  0x99   : > { %663 = vmatmul.bf16.gmra.mxu2 %v1369_v30  ;;  %703 = vmatmul.bf16.gmra.mxu3 %v1377_v31 }
  0xa8   : > { %588 = vmatmul.bf16.gmra.mxu0 %v1354_v32  ;;  %628 = vmatmul.bf16.gmra.mxu1 %v1362_v33 }
  0xa9   : > { %668 = vmatmul.bf16.gmra.mxu2 %v1370_v34  ;;  %708 = vmatmul.bf16.gmra.mxu3 %v1378_v35 }
  0xb8   : > { %593 = vmatmul.bf16.gmra.mxu0 %v1355_v36  ;;  %633 = vmatmul.bf16.gmra.mxu1 %v1363_v37 }
  0xb9   : > { %673 = vmatmul.bf16.gmra.mxu2 %v1371_v38  ;;  %713 = vmatmul.bf16.gmra.mxu3 %v1379_v39 }
  0xc5   : > { %v559_v41 = vpop.f32.mrf.mxu0  ;;  %v599_v42 = vpop.f32.mrf.mxu1 }
  0xc6   : > { %v727_v43 = vadd.f32 %v1810_v40, %v559_v41  ;;  %v743_v44 = vadd.f32 %v1810_v40, %v599_v42 }
  0xc8   : > { %791 = vst [vmem:[%s1814_s27] sm:$0xff] %v727_v43 }
  0xc9   : > { %807 = vst [vmem:[%s1814_s27 + $0x80] sm:$0xff] %v743_v44 }
  0xcc   : > { %v639_v45 = vpop.f32.mrf.mxu2  ;;  %v679_v46 = vpop.f32.mrf.mxu3 }
  0xcd   : > { %v759_v47 = vadd.f32 %v1810_v40, %v639_v45  ;;  %v775_v48 = vadd.f32 %v1810_v40, %v679_v46  ;;  %v561_v49 = vpop.f32.mrf.mxu0  ;;  %v601_v50 = vpop.f32.mrf.mxu1 }
  0xce   : > { %v728_v51 = vadd.f32 %v1810_v40, %v561_v49  ;;  %v744_v52 = vadd.f32 %v1810_v40, %v601_v50 }
  0xcf   : > { %823 = vst [vmem:[%s1814_s27 + $0x100] sm:$0xff] %v759_v47 }
  0xd0   : > { %839 = vst [vmem:[%s1814_s27 + $0x180] sm:$0xff] %v775_v48 }
  0xd1   : > { %792 = vst [vmem:[%s1814_s27 + $0x8] sm:$0xff] %v728_v51 }
  0xd2   : > { %808 = vst [vmem:[%s1814_s27 + $0x88] sm:$0xff] %v744_v52 }
  0xd4   : > { %v641_v53 = vpop.f32.mrf.mxu2  ;;  %v681_v54 = vpop.f32.mrf.mxu3 }
  0xd5   : > { %v760_v55 = vadd.f32 %v1810_v40, %v641_v53  ;;  %v776_v56 = vadd.f32 %v1810_v40, %v681_v54  ;;  %v564_v57 = vpop.f32.mrf.mxu0  ;;  %v604_v58 = vpop.f32.mrf.mxu1 }
  0xd6   : > { %v729_v59 = vadd.f32 %v1810_v40, %v564_v57  ;;  %v745_v60 = vadd.f32 %v1810_v40, %v604_v58 }
  0xd7   : > { %824 = vst [vmem:[%s1814_s27 + $0x108] sm:$0xff] %v760_v55 }
  0xd8   : > { %840 = vst [vmem:[%s1814_s27 + $0x188] sm:$0xff] %v776_v56 }
  0xd9   : > { %793 = vst [vmem:[%s1814_s27 + $0x10] sm:$0xff] %v729_v59 }
  0xda   : > { %809 = vst [vmem:[%s1814_s27 + $0x90] sm:$0xff] %v745_v60 }
  0xdc   : > { %v644_v61 = vpop.f32.mrf.mxu2  ;;  %v684_v62 = vpop.f32.mrf.mxu3 }
  0xdd   : > { %v761_v63 = vadd.f32 %v1810_v40, %v644_v61  ;;  %v777_v0 = vadd.f32 %v1810_v40, %v684_v62  ;;  %v566_v1 = vpop.f32.mrf.mxu0  ;;  %v606_v2 = vpop.f32.mrf.mxu1 }
  0xde   : > { %v730_v3 = vadd.f32 %v1810_v40, %v566_v1  ;;  %v746_v4 = vadd.f32 %v1810_v40, %v606_v2 }
  0xdf   : > { %825 = vst [vmem:[%s1814_s27 + $0x110] sm:$0xff] %v761_v63 }
  0xe0   : > { %841 = vst [vmem:[%s1814_s27 + $0x190] sm:$0xff] %v777_v0 }
  0xe1   : > { %794 = vst [vmem:[%s1814_s27 + $0x18] sm:$0xff] %v730_v3 }
  0xe2   : > { %810 = vst [vmem:[%s1814_s27 + $0x98] sm:$0xff] %v746_v4 }
  0xe4   : > { %v646_v5 = vpop.f32.mrf.mxu2  ;;  %v686_v6 = vpop.f32.mrf.mxu3 }
  0xe5   : > { %v762_v7 = vadd.f32 %v1810_v40, %v646_v5  ;;  %v778_v8 = vadd.f32 %v1810_v40, %v686_v6  ;;  %v569_v9 = vpop.f32.mrf.mxu0  ;;  %v609_v10 = vpop.f32.mrf.mxu1 }
  0xe6   : > { %v731_v11 = vadd.f32 %v1810_v40, %v569_v9  ;;  %v747_v12 = vadd.f32 %v1810_v40, %v609_v10 }
  0xe7   : > { %826 = vst [vmem:[%s1814_s27 + $0x118] sm:$0xff] %v762_v7 }
  0xe8   : > { %842 = vst [vmem:[%s1814_s27 + $0x198] sm:$0xff] %v778_v8 }
  0xe9   : > { %795 = vst [vmem:[%s1814_s27 + $0x20] sm:$0xff] %v731_v11 }
  0xea   : > { %811 = vst [vmem:[%s1814_s27 + $0xa0] sm:$0xff] %v747_v12 }
  0xec   : > { %v649_v13 = vpop.f32.mrf.mxu2  ;;  %v689_v14 = vpop.f32.mrf.mxu3 }
  0xed   : > { %v763_v15 = vadd.f32 %v1810_v40, %v649_v13  ;;  %v779_v16 = vadd.f32 %v1810_v40, %v689_v14  ;;  %v571_v17 = vpop.f32.mrf.mxu0  ;;  %v611_v18 = vpop.f32.mrf.mxu1 }
  0xee   : > { %v732_v19 = vadd.f32 %v1810_v40, %v571_v17  ;;  %v748_v20 = vadd.f32 %v1810_v40, %v611_v18 }
  0xef   : > { %827 = vst [vmem:[%s1814_s27 + $0x120] sm:$0xff] %v763_v15 }
  0xf0   : > { %843 = vst [vmem:[%s1814_s27 + $0x1a0] sm:$0xff] %v779_v16 }
  0xf1   : > { %796 = vst [vmem:[%s1814_s27 + $0x28] sm:$0xff] %v732_v19 }
  0xf2   : > { %812 = vst [vmem:[%s1814_s27 + $0xa8] sm:$0xff] %v748_v20 }
  0xf4   : > { %v651_v21 = vpop.f32.mrf.mxu2  ;;  %v691_v22 = vpop.f32.mrf.mxu3 }
  0xf5   : > { %v764_v23 = vadd.f32 %v1810_v40, %v651_v21  ;;  %v780_v24 = vadd.f32 %v1810_v40, %v691_v22  ;;  %v574_v25 = vpop.f32.mrf.mxu0  ;;  %v614_v26 = vpop.f32.mrf.mxu1 }
  0xf6   : > { %v733_v27 = vadd.f32 %v1810_v40, %v574_v25  ;;  %v749_v28 = vadd.f32 %v1810_v40, %v614_v26 }
  0xf7   : > { %828 = vst [vmem:[%s1814_s27 + $0x128] sm:$0xff] %v764_v23 }
  0xf8   : > { %844 = vst [vmem:[%s1814_s27 + $0x1a8] sm:$0xff] %v780_v24 }
  0xf9   : > { %797 = vst [vmem:[%s1814_s27 + $0x30] sm:$0xff] %v733_v27 }
  0xfa   : > { %813 = vst [vmem:[%s1814_s27 + $0xb0] sm:$0xff] %v749_v28 }
  0xfc   : > { %v654_v29 = vpop.f32.mrf.mxu2  ;;  %v694_v30 = vpop.f32.mrf.mxu3 }
  0xfd   : > { %v765_v31 = vadd.f32 %v1810_v40, %v654_v29  ;;  %v781_v32 = vadd.f32 %v1810_v40, %v694_v30  ;;  %v576_v33 = vpop.f32.mrf.mxu0  ;;  %v616_v34 = vpop.f32.mrf.mxu1 }
  0xfe   : > { %v734_v35 = vadd.f32 %v1810_v40, %v576_v33  ;;  %v750_v36 = vadd.f32 %v1810_v40, %v616_v34 }
  0xff   : > { %829 = vst [vmem:[%s1814_s27 + $0x130] sm:$0xff] %v765_v31 }
 0x100   : > { %845 = vst [vmem:[%s1814_s27 + $0x1b0] sm:$0xff] %v781_v32 }
 0x101   : > { %798 = vst [vmem:[%s1814_s27 + $0x38] sm:$0xff] %v734_v35 }
 0x102   : > { %814 = vst [vmem:[%s1814_s27 + $0xb8] sm:$0xff] %v750_v36 }
 0x104   : > { %v656_v37 = vpop.f32.mrf.mxu2  ;;  %v696_v38 = vpop.f32.mrf.mxu3 }
 0x105   : > { %v766_v39 = vadd.f32 %v1810_v40, %v656_v37  ;;  %v782_v41 = vadd.f32 %v1810_v40, %v696_v38  ;;  %v579_v42 = vpop.f32.mrf.mxu0  ;;  %v619_v43 = vpop.f32.mrf.mxu1 }
 0x106   : > { %v735_v44 = vadd.f32 %v1810_v40, %v579_v42  ;;  %v751_v45 = vadd.f32 %v1810_v40, %v619_v43 }
 0x107   : > { %830 = vst [vmem:[%s1814_s27 + $0x138] sm:$0xff] %v766_v39 }
 0x108   : > { %846 = vst [vmem:[%s1814_s27 + $0x1b8] sm:$0xff] %v782_v41 }
 0x109   : > { %799 = vst [vmem:[%s1814_s27 + $0x40] sm:$0xff] %v735_v44 }
 0x10a   : > { %815 = vst [vmem:[%s1814_s27 + $0xc0] sm:$0xff] %v751_v45 }
 0x10c   : > { %v659_v46 = vpop.f32.mrf.mxu2  ;;  %v699_v47 = vpop.f32.mrf.mxu3 }
 0x10d   : > { %v767_v48 = vadd.f32 %v1810_v40, %v659_v46  ;;  %v783_v49 = vadd.f32 %v1810_v40, %v699_v47  ;;  %v581_v50 = vpop.f32.mrf.mxu0  ;;  %v621_v51 = vpop.f32.mrf.mxu1 }
 0x10e   : > { %v736_v52 = vadd.f32 %v1810_v40, %v581_v50  ;;  %v752_v53 = vadd.f32 %v1810_v40, %v621_v51 }
 0x10f   : > { %831 = vst [vmem:[%s1814_s27 + $0x140] sm:$0xff] %v767_v48 }
 0x110   : > { %847 = vst [vmem:[%s1814_s27 + $0x1c0] sm:$0xff] %v783_v49 }
 0x111   : > { %800 = vst [vmem:[%s1814_s27 + $0x48] sm:$0xff] %v736_v52 }
 0x112   : > { %816 = vst [vmem:[%s1814_s27 + $0xc8] sm:$0xff] %v752_v53 }
 0x114   : > { %v661_v54 = vpop.f32.mrf.mxu2  ;;  %v701_v55 = vpop.f32.mrf.mxu3 }
 0x115   : > { %v768_v56 = vadd.f32 %v1810_v40, %v661_v54  ;;  %v784_v57 = vadd.f32 %v1810_v40, %v701_v55  ;;  %v584_v58 = vpop.f32.mrf.mxu0  ;;  %v624_v59 = vpop.f32.mrf.mxu1 }
 0x116   : > { %v737_v60 = vadd.f32 %v1810_v40, %v584_v58  ;;  %v753_v61 = vadd.f32 %v1810_v40, %v624_v59 }
 0x117   : > { %832 = vst [vmem:[%s1814_s27 + $0x148] sm:$0xff] %v768_v56 }
 0x118   : > { %848 = vst [vmem:[%s1814_s27 + $0x1c8] sm:$0xff] %v784_v57 }
 0x119   : > { %801 = vst [vmem:[%s1814_s27 + $0x50] sm:$0xff] %v737_v60 }
 0x11a   : > { %817 = vst [vmem:[%s1814_s27 + $0xd0] sm:$0xff] %v753_v61 }
 0x11c   : > { %v664_v62 = vpop.f32.mrf.mxu2  ;;  %v704_v63 = vpop.f32.mrf.mxu3 }
 0x11d   : > { %v769_v0 = vadd.f32 %v1810_v40, %v664_v62  ;;  %v785_v1 = vadd.f32 %v1810_v40, %v704_v63  ;;  %v586_v2 = vpop.f32.mrf.mxu0  ;;  %v626_v3 = vpop.f32.mrf.mxu1 }
 0x11e   : > { %v738_v4 = vadd.f32 %v1810_v40, %v586_v2  ;;  %v754_v5 = vadd.f32 %v1810_v40, %v626_v3 }
 0x11f   : > { %833 = vst [vmem:[%s1814_s27 + $0x150] sm:$0xff] %v769_v0 }
 0x120   : > { %849 = vst [vmem:[%s1814_s27 + $0x1d0] sm:$0xff] %v785_v1 }
 0x121   : > { %802 = vst [vmem:[%s1814_s27 + $0x58] sm:$0xff] %v738_v4 }
 0x122   : > { %818 = vst [vmem:[%s1814_s27 + $0xd8] sm:$0xff] %v754_v5 }
 0x124   : > { %v666_v6 = vpop.f32.mrf.mxu2  ;;  %v706_v7 = vpop.f32.mrf.mxu3 }
 0x125   : > { %v770_v8 = vadd.f32 %v1810_v40, %v666_v6  ;;  %v786_v9 = vadd.f32 %v1810_v40, %v706_v7  ;;  %v589_v10 = vpop.f32.mrf.mxu0  ;;  %v629_v11 = vpop.f32.mrf.mxu1 }
 0x126   : > { %v739_v12 = vadd.f32 %v1810_v40, %v589_v10  ;;  %v755_v13 = vadd.f32 %v1810_v40, %v629_v11 }
 0x127   : > { %834 = vst [vmem:[%s1814_s27 + $0x158] sm:$0xff] %v770_v8 }
 0x128   : > { %850 = vst [vmem:[%s1814_s27 + $0x1d8] sm:$0xff] %v786_v9 }
 0x129   : > { %803 = vst [vmem:[%s1814_s27 + $0x60] sm:$0xff] %v739_v12 }
 0x12a   : > { %819 = vst [vmem:[%s1814_s27 + $0xe0] sm:$0xff] %v755_v13 }
 0x12c   : > { %v669_v14 = vpop.f32.mrf.mxu2  ;;  %v709_v15 = vpop.f32.mrf.mxu3 }
 0x12d   : > { %v771_v16 = vadd.f32 %v1810_v40, %v669_v14  ;;  %v787_v17 = vadd.f32 %v1810_v40, %v709_v15  ;;  %v591_v18 = vpop.f32.mrf.mxu0  ;;  %v631_v19 = vpop.f32.mrf.mxu1 }
 0x12e   : > { %v740_v20 = vadd.f32 %v1810_v40, %v591_v18  ;;  %v756_v21 = vadd.f32 %v1810_v40, %v631_v19 }
 0x12f   : > { %835 = vst [vmem:[%s1814_s27 + $0x160] sm:$0xff] %v771_v16 }
 0x130   : > { %851 = vst [vmem:[%s1814_s27 + $0x1e0] sm:$0xff] %v787_v17 }
 0x131   : > { %804 = vst [vmem:[%s1814_s27 + $0x68] sm:$0xff] %v740_v20 }
 0x132   : > { %820 = vst [vmem:[%s1814_s27 + $0xe8] sm:$0xff] %v756_v21 }
 0x134   : > { %v671_v22 = vpop.f32.mrf.mxu2  ;;  %v711_v23 = vpop.f32.mrf.mxu3 }
 0x135   : > { %v772_v24 = vadd.f32 %v1810_v40, %v671_v22  ;;  %v788_v25 = vadd.f32 %v1810_v40, %v711_v23  ;;  %v594_v26 = vpop.f32.mrf.mxu0  ;;  %v634_v27 = vpop.f32.mrf.mxu1 }
 0x136   : > { %v741_v28 = vadd.f32 %v1810_v40, %v594_v26  ;;  %v757_v29 = vadd.f32 %v1810_v40, %v634_v27 }
 0x137   : > { %836 = vst [vmem:[%s1814_s27 + $0x168] sm:$0xff] %v772_v24 }
 0x138   : > { %852 = vst [vmem:[%s1814_s27 + $0x1e8] sm:$0xff] %v788_v25 }
 0x139   : > { %805 = vst [vmem:[%s1814_s27 + $0x70] sm:$0xff] %v741_v28 }
 0x13a   : > { %821 = vst [vmem:[%s1814_s27 + $0xf0] sm:$0xff] %v757_v29 }
 0x13c   : > { %v674_v30 = vpop.f32.mrf.mxu2  ;;  %v714_v31 = vpop.f32.mrf.mxu3 }
 0x13d   : > { %v773_v32 = vadd.f32 %v1810_v40, %v674_v30  ;;  %v789_v33 = vadd.f32 %v1810_v40, %v714_v31  ;;  %v596_v34 = vpop.f32.mrf.mxu0  ;;  %v636_v35 = vpop.f32.mrf.mxu1 }
 0x13e   : > { %v742_v36 = vadd.f32 %v1810_v40, %v596_v34  ;;  %v758_v37 = vadd.f32 %v1810_v40, %v636_v35 }
 0x13f   : > { %837 = vst [vmem:[%s1814_s27 + $0x170] sm:$0xff] %v773_v32 }
 0x140   : > { %853 = vst [vmem:[%s1814_s27 + $0x1f0] sm:$0xff] %v789_v33 }
 0x141   : > { %806 = vst [vmem:[%s1814_s27 + $0x78] sm:$0xff] %v742_v36 }
 0x142   : > { %822 = vst [vmem:[%s1814_s27 + $0xf8] sm:$0xff] %v758_v37 }
 0x144   : > { %v676_v38 = vpop.f32.mrf.mxu2  ;;  %v716_v39 = vpop.f32.mrf.mxu3 }
 0x145   : > { %v774_v41 = vadd.f32 %v1810_v40, %v676_v38  ;;  %v790_v42 = vadd.f32 %v1810_v40, %v716_v39 }
 0x147   : > { %838 = vst [vmem:[%s1814_s27 + $0x178] sm:$0xff] %v774_v41 }
 0x148   : > { %854 = vst [vmem:[%s1814_s27 + $0x1f8] sm:$0xff] %v790_v42 }
 0x149   : > { %1570 = shalt.err (!%p1567_p12)
}
 0x14a   : > { %s1634_s6 = smov 128   ;;  %s1635_s1 = smov 8  }
 0x14b   : > { %1411 = dma.vmem_to_hbm [thread:$0]  (%p1737_p3), %s1065_s15, 8192, %s1067_s24, %s1052_s25, %s1634_s6, %s1634_s6, %s1635_s1  }
 0x14c PF: > { %p1428_p13 = scmp.ge.s32.totalorder %s1629_s17, 2  ;;  %s1081_s20 = sand.u32 1, %s1609_s12  }
 0x14d   : > { %s1082_s22 = scalar_lea.sflag [#allocation4], %s1081_s20 }
 0x14e   : > { %p1422_p0 = pnand %p1428_p13, %p1705_p6 }
 0x150   : > { %p1423_p5 = pneg %p1422_p0 }
 0x152   : > { %1604 = dma.done.wait (%p1423_p5), %s1082_s22, 8192  }
 0x153   : > { %1606 = vsyncadd (%p1423_p5), %s1082_s22, 4294959104  ;;  %s20_s17 = sadd.s32 1, %s1629_s17   ;;  %s1995_s12 = smov %s1613_s13 }
 0x154   : > { %p17_p7 = scmp.ge.s32.totalorder %s20_s17, 6   ;;  %s1996_s13 = smov %s1617_s14 }
 0x155   : > { %s1997_s14 = smov %s1746_s18  ;;  %s1998_s15 = smov %s1625_s16 }
 0x156   : > { %s1999_s16 = smov %s2001_s5  ;;  %19 = sbr.rel (!%p17_p7) target bundleno = 9 (0x9), region = 90 }
 0x15b   :  { %1088 = vsyncpa [#allocation3], 1 }
 0x15c   :  { %1090 = vsyncpa [#allocation3 + $0x1], 1 }
 0x15d   :  { %1091 = vsyncpa [#allocation6], 1 }
 0x15e   :  { %1092 = vsyncpa [#allocation4], 1 }
 0x15f   :  { %1094 = vsyncpa [#allocation4 + $0x1], 1 }

</bundles_post_ra>
